<compile_context>
chip_gen: v7x
topology: tpu7x:2x2x1
jax: 0.10.0
libtpu: 0.0.40
codegen_flags: <defaults>
</compile_context>

<pallas_src>
import math

import jax
import jax.numpy as jnp
from jax.experimental import pallas as pl
from jax.experimental.pallas import tpu as pltpu

_LANE = 128
_TARGET_CHUNK_BYTES = 8 << 20   # ~8 MiB per DMA chunk for large parameters
_MAX_CHUNKS = 16                # cap on concurrently outstanding DMAs / semaphores


def _ceil_div(a, b):
    return -(-a // b)


def _make_chunked_dma_copy_kernel(nchunks, chunk_rows, rows):
    """HBM->HBM copy of a (rows, 128) array: start all chunk DMAs, then wait on all."""

    def kernel(src_ref, dst_ref, sems):
        copies = []
        for c in range(nchunks):            # static Python loop (shapes are static)
            start = c * chunk_rows
            size = min(chunk_rows, rows - start)
            cp = pltpu.make_async_copy(
                src_ref.at[start:start + size],
                dst_ref.at[start:start + size],
                sems.at[c],
            )
            cp.start()
            copies.append(cp)
        for cp in copies:                   # all DMAs are in flight before any wait
            cp.wait()

    return kernel


def _whole_array_dma_copy_kernel(src_ref, dst_ref, sem):
    cp = pltpu.make_async_copy(src_ref, dst_ref, sem)
    cp.start()
    cp.wait()


def _poison_batch_forward_impl(poison):
    shape, dtype = poison.shape, poison.dtype
    total = math.prod(shape)
    itemsize = jnp.dtype(dtype).itemsize

    if total % _LANE == 0:
        # Main path: flatten to a contiguous (rows, 128) view (a bitcast for the
        # row-major parameter) and chunk the HBM->HBM DMA along rows.
        rows = total // _LANE
        row_bytes = _LANE * itemsize
        nchunks = max(1, min(_MAX_CHUNKS,
                             _ceil_div(rows * row_bytes, _TARGET_CHUNK_BYTES)))
        chunk_rows = _ceil_div(rows, nchunks)
        nchunks = _ceil_div(rows, chunk_rows)   # drop empty trailing chunks

        flat = poison.reshape(rows, _LANE)
        out = pl.pallas_call(
            _make_chunked_dma_copy_kernel(nchunks, chunk_rows, rows),
            out_shape=jax.ShapeDtypeStruct((rows, _LANE), dtype),
            in_specs=[pl.BlockSpec(memory_space=pl.ANY)],
            out_specs=pl.BlockSpec(memory_space=pl.ANY),
            scratch_shapes=[pltpu.SemaphoreType.DMA((nchunks,))],
        )(flat)
        return out.reshape(shape)

    # Fallback for element counts not divisible by 128: a single whole-array
    # HBM->HBM DMA (DMAs have no (8,128)/VMEM constraints, so any shape works).
    return pl.pallas_call(
        _whole_array_dma_copy_kernel,
        out_shape=jax.ShapeDtypeStruct(shape, dtype),
        in_specs=[pl.BlockSpec(memory_space=pl.ANY)],
        out_specs=pl.BlockSpec(memory_space=pl.ANY),
        scratch_shapes=[pltpu.SemaphoreType.DMA],
    )(poison)


# No input_output_aliases and no donation: the caller's parameter buffer stays valid
# and XLA does not need to insert a defensive copy before the pallas custom call.
poison_batch_forward = jax.jit(_poison_batch_forward_impl)


def make_poison_batch(point):
    """Mimics PoisonBatch.__init__: parameter = point.unsqueeze(0).clone()."""
    return jnp.expand_dims(point, 0)  # (1, C, H, W) — plain-JAX glue


if __name__ == "__main__":
    key = jax.random.PRNGKey(0)
    # CIFAR-like single image: point (C, H, W) = (3, 32, 32).
    point = jax.random.normal(key, (3, 32, 32), dtype=jnp.float32)

    poison_param = make_poison_batch(point)          # (1, 3, 32, 32)
    out = poison_batch_forward(poison_param)
    out = jax.block_until_ready(out)

    # Sanity check: forward() must return exactly the stored parameter.
    assert out.shape == (1, 3, 32, 32)
    assert out.dtype == jnp.float32
    assert bool(jnp.array_equal(out, poison_param))

    print("KERNEL_OK")
</pallas_src>

<mosaic_0001>
module attributes {stable_mosaic.version = 11 : i64} {
  func.func @kernel(%arg0: memref<24x128xf32, #tpu.memory_space<any>>, %arg1: memref<24x128xf32, #tpu.memory_space<any>>, %arg2: memref<1x!tpu.dma_semaphore, #tpu.memory_space<semaphore_mem>>) attributes {dimension_semantics = [], scalar_prefetch = 0 : i64, scratch_operands = 1 : i64, tpu.core_type = #tpu.core_type<tc>} {
    %c0_i32 = arith.constant 0 : i32
    %c0_i32_0 = arith.constant 0 : i32
    %c0_i32_1 = arith.constant 0 : i32
    %0 = tpu.memref_slice %arg0[%c0_i32_0, %c0_i32_1] : memref<24x128xf32, #tpu.memory_space<any>> -> memref<24x128xf32, #tpu.memory_space<any>>
    %c0_i32_2 = arith.constant 0 : i32
    %c0_i32_3 = arith.constant 0 : i32
    %1 = tpu.memref_slice %arg1[%c0_i32_2, %c0_i32_3] : memref<24x128xf32, #tpu.memory_space<any>> -> memref<24x128xf32, #tpu.memory_space<any>>
    %2 = tpu.memref_slice %arg2[%c0_i32] : memref<1x!tpu.dma_semaphore, #tpu.memory_space<semaphore_mem>> -> memref<1x!tpu.dma_semaphore, #tpu.memory_space<semaphore_mem>>
    %3 = tpu.memref_squeeze %2 : memref<1x!tpu.dma_semaphore, #tpu.memory_space<semaphore_mem>> -> memref<!tpu.dma_semaphore, #tpu.memory_space<semaphore_mem>>
    tpu.enqueue_dma source(%0 : memref<24x128xf32, #tpu.memory_space<any>>) target(%1 : memref<24x128xf32, #tpu.memory_space<any>>) target_semaphore(%3 : memref<!tpu.dma_semaphore, #tpu.memory_space<semaphore_mem>>)
    %c0_i32_4 = arith.constant 0 : i32
    %c0_i32_5 = arith.constant 0 : i32
    %c0_i32_6 = arith.constant 0 : i32
    %4 = tpu.memref_slice %arg0[%c0_i32_5, %c0_i32_6] : memref<24x128xf32, #tpu.memory_space<any>> -> memref<24x128xf32, #tpu.memory_space<any>>
    %c0_i32_7 = arith.constant 0 : i32
    %c0_i32_8 = arith.constant 0 : i32
    %5 = tpu.memref_slice %arg1[%c0_i32_7, %c0_i32_8] : memref<24x128xf32, #tpu.memory_space<any>> -> memref<24x128xf32, #tpu.memory_space<any>>
    %6 = tpu.memref_slice %arg2[%c0_i32_4] : memref<1x!tpu.dma_semaphore, #tpu.memory_space<semaphore_mem>> -> memref<1x!tpu.dma_semaphore, #tpu.memory_space<semaphore_mem>>
    %7 = tpu.memref_squeeze %6 : memref<1x!tpu.dma_semaphore, #tpu.memory_space<semaphore_mem>> -> memref<!tpu.dma_semaphore, #tpu.memory_space<semaphore_mem>>
    tpu.wait_dma2 semaphore(%7 : memref<!tpu.dma_semaphore, #tpu.memory_space<semaphore_mem>>) src(%4 : memref<24x128xf32, #tpu.memory_space<any>>) dst(%5 : memref<24x128xf32, #tpu.memory_space<any>>)
    return
  }
}

</mosaic_0001>

<bundles_post_ra>
// kernel: _poison_batch_forward_impl.1
= control target key start
LH: loop header
LB: loop body
LE: loop exit
PB: predicated region body
PF: predicated region fallthrough
CT: control target
= control target key end

     0   :  { %s100_s0 = inlined_call_operand.vmem [shape: f32[24,128], index: 0, kind: input, shape index: {}]   ;;  %s101_s1 = inlined_call_operand.vmem [shape: f32[24,128], index: 1, kind: output, shape index: {}]  }
   0x1   :  { %v38_v0 = vld [vmem:[%s100_s0] sm:$0xff]  ;;  %v40_v1 = vld [vmem:[%s100_s0 + $0x8] sm:$0xff]  ;;  %v42_v2 = vld [vmem:[%s100_s0 + $0x10] sm:$0xff] }
   0x2   :  { %39 = vst [vmem:[%s101_s1] sm:$0xff] %v38_v0  ;;  %41 = vst [vmem:[%s101_s1 + $0x8] sm:$0xff] %v40_v1 }
   0x3   :  { %43 = vst [vmem:[%s101_s1 + $0x10] sm:$0xff] %v42_v2 }
   0x4   :  { %51 = vsyncadd [#allocation2], 384 }
   0x5   :  { %70 = dma.done.wait [#allocation2], 384 }
   0x6   :  { %71 = vsyncadd [#allocation2], 4294966912 }
   0x7   :  { %55 = vsyncmov [#allocation2] }
   0xa   :  { %s56_s18 = vpop.sfrf %55 }
   0xb   :  { %p69_p0 = scmp.ne.s32.totalorder %s56_s18, 0 }
   0xd   :  { %60 = shalt.err (%p69_p0)  }

</bundles_post_ra>
